<compile_context>
chip_gen: v7x
topology: tpu7x:2x2x1
jax: 0.10.0
libtpu: 0.0.40
codegen_flags: <defaults>
</compile_context>

<pallas_src>
import functools

import jax
import jax.numpy as jnp
from jax.experimental import pallas as pl
from jax.experimental.pallas import tpu as pltpu


_VMEM_BUDGET_BYTES = 12 * 1024 * 1024   # double-buffered blocks + selectors + temps

# Exact bf16 pieces per element: x == sum(pieces) exactly (for normal floats).
_BF16_PIECES = {
    jnp.dtype(jnp.float32): 3,
    jnp.dtype(jnp.bfloat16): 1,
    jnp.dtype(jnp.float16): 2,
}


def _round_up(x: int, m: int) -> int:
    return ((x + m - 1) // m) * m


def _sublane_tile(dtype) -> int:
    # Native sublane tile height: 8 for 32-bit; packed dtypes stack along sublanes.
    return 8 * max(1, 4 // jnp.dtype(dtype).itemsize)


def _pick_w_chunk(W: int, bs: int, n_pieces: int) -> int:
    # MACs per output element = n_pieces * bs * wc; keep <= ~512 so the selector
    # matmuls stay well under the MXU:HBM crossover of every generation (v5e is the
    # tightest), i.e. the MXU work hides under the DMAs.
    wc = 256
    while wc > 8 and n_pieces * bs * wc > 512:
        wc //= 2
    wc = min(W, wc)
    # Bound the static unroll for very wide images (costs some MXU margin only).
    while W // wc > 8 and wc < W:
        wc = min(W, wc * 2)
    return wc


def _pick_row_block(R, sub, per_row_bytes, fixed_bytes, budget_bytes, min_tiles):
    """Rows of the merged (Cp*H) dim per grid step (sublane-aligned or the full dim)."""
    avail = max(0, budget_bytes - fixed_bytes)
    max_rows = max(1, avail // max(1, per_row_bytes))
    if min_tiles > 1 and R >= min_tiles * sub:
        # v7x megacore balance: make sure there are >= min_tiles grid steps.
        max_rows = min(max_rows, R // min_tiles)
    if R <= max_rows:
        return R                                  # full dim: always a legal block
    best = 0
    d = sub
    while d <= max_rows:                          # sublane-aligned divisors of R
        if R % d == 0:
            best = d
        d += sub
    if best >= max(sub, max_rows // 2):
        return best                               # good divisor -> clean tiling
    # Awkward R: cdiv tiling with an aligned block and a ragged last tile.  Safe here:
    # each output row depends only on the same input row, so the clamped padding of
    # the last tile is never observed.
    return min(max(sub, (max_rows // sub) * sub), R)


def _split_exact_bf16(a, n_pieces):
    """Exact split a == sum(pieces), every piece bf16-representable (VPU only)."""
    if n_pieces == 1:
        return [a.astype(jnp.bfloat16)]
    pieces = []
    rem = a.astype(jnp.float32)
    for _ in range(n_pieces - 1):
        hi = rem.astype(jnp.bfloat16)
        pieces.append(hi)
        rem = rem - hi.astype(jnp.float32)        # exact (Sterbenz)
    pieces.append(rem.astype(jnp.bfloat16))       # remainder fits in 8 bits -> exact
    return pieces


def _d2s_kernel(x_ref, s_ref, o_ref, *, bs, width, wc, n_pieces):
    """One (batch, row-tile) step of the fused NCHW pixel shuffle.

    x_ref: (1, bs*bs, Rblk, W)    raw NCHW rows; channel group g = b1*bs + b2
    s_ref: (bs, wc, wc*bs)        bf16 0/1 riffle selectors, S[b2, w, w*bs + b2] = 1
    o_ref: (1, Rblk, bs*bs*W)     output rows, lane index = b1*(W*bs) + w*bs + b2
    """
    w_out = width * bs
    n_chunks = -(-width // wc)
    for b1 in range(bs):                               # static unroll (bs is tiny)
        for c in range(n_chunks):
            w0 = c * wc
            cw = min(wc, width - w0)
            acc = None
            for b2 in range(bs):
                g = b1 * bs + b2
                a = x_ref[0, g, :, w0:w0 + cw]         # (Rblk, cw) contiguous load
                sel = s_ref[b2, :cw, :cw * bs]         # (cw, cw*bs) 0/1 selector
                for piece in _split_exact_bf16(a, n_pieces):
                    t = jnp.dot(piece, sel, preferred_element_type=jnp.float32)
                    acc = t if acc is None else acc + t
            col0 = b1 * w_out + w0 * bs
            o_ref[0, :, col0:col0 + cw * bs] = acc.astype(o_ref.dtype)


def depth_to_space(x: jax.Array, block_size: int) -> jax.Array:
    """NCHW DepthToSpace (pixel shuffle), equivalent to the PyTorch module."""
    bs = int(block_size)
    N, C, H, W = x.shape
    if C % (bs * bs) != 0:
        raise ValueError("C must be divisible by block_size**2")
    if bs == 1:
        return x
    Cp = C // (bs * bs)
    dtype = jnp.dtype(x.dtype)
    if dtype not in _BF16_PIECES:
        # TODO(synk): integer / fp8 inputs need a non-MXU lane-interleave path.
        raise NotImplementedError(f"unsupported dtype for the Pallas kernel: {dtype}")
    n_pieces = _BF16_PIECES[dtype]

    G = bs * bs                  # channel groups (b1, b2)
    R = Cp * H                   # merged (cp, h) row dim -- 1:1 with output rows
    L = G * W                    # fused (b1, w, b2) output lane dim

    wc = _pick_w_chunk(W, bs, n_pieces)
    # Constant riffle selectors S[b2, w, w*bs + b2] = 1 (0/1 are exact in bf16).
    w_ids = jnp.arange(wc, dtype=jnp.int32)
    l_ids = jnp.arange(wc * bs, dtype=jnp.int32)
    b2_ids = jnp.arange(bs, dtype=jnp.int32)
    sel = (l_ids[None, None, :]
           == w_ids[None, :, None] * bs + b2_ids[:, None, None]).astype(jnp.bfloat16)

    # Free row-major view (metadata only -- no HBM traffic).
    x_v = x.reshape(N, G, R, W)

    # Padding-aware VMEM accounting: (sublane, 128)-tile padding of every operand,
    # double-buffered input/output blocks, plus in-kernel temporaries.
    sub = _sublane_tile(dtype)
    isz = dtype.itemsize
    x_row = G * _round_up(W, 128) * isz
    o_row = _round_up(L, 128) * isz
    tmp_row = wc * bs * 4 + wc * (isz + 2 * n_pieces)        # f32 acc + bf16 pieces
    per_row = 2 * (x_row + o_row) + tmp_row
    sel_bytes = 2 * bs * _round_up(wc, 16) * _round_up(wc * bs, 128) * 2
    min_tiles = 2 if N == 1 else 1                           # v7x: keep both cores fed
    rblk = _pick_row_block(R, sub, per_row, sel_bytes, _VMEM_BUDGET_BYTES, min_tiles)
    n_r = pl.cdiv(R, rblk)

    out_v = pl.pallas_call(
        functools.partial(_d2s_kernel, bs=bs, width=W, wc=wc, n_pieces=n_pieces),
        out_shape=jax.ShapeDtypeStruct((N, R, L), x.dtype),
        grid=(N, n_r),
        in_specs=[
            pl.BlockSpec((1, G, rblk, W), lambda n, r: (n, 0, r, 0)),
            pl.BlockSpec((bs, wc, wc * bs), lambda n, r: (0, 0, 0)),
        ],
        out_specs=pl.BlockSpec((1, rblk, L), lambda n, r: (n, r, 0)),
        compiler_params=pltpu.CompilerParams(
            dimension_semantics=("parallel", "parallel")),
    )(x_v, sel)

    # Free view back to NCHW: rows are (cp, h), lanes are (b1, w, b2).
    return out_v.reshape(N, Cp, H * bs, W * bs)


def _reference_depth_to_space(x: jax.Array, bs: int) -> jax.Array:
    # Exact transcription of the PyTorch module's forward (NCHW).
    N, C, H, W = x.shape
    Cp = C // (bs * bs)
    x6 = x.reshape(N, bs, bs, Cp, H, W)
    x6 = jnp.transpose(x6, (0, 3, 4, 1, 5, 2))
    return x6.reshape(N, Cp, H * bs, W * bs)


if __name__ == "__main__":
    key = jax.random.PRNGKey(0)
    N, C, H, W = 2, 16, 16, 16
    block_size = 2

    x = jax.random.normal(key, (N, C, H, W), dtype=jnp.float32)

    out = jax.block_until_ready(depth_to_space(x, block_size))

    Cp = C // (block_size * block_size)
    assert out.shape == (N, Cp, H * block_size, W * block_size)

    ref = _reference_depth_to_space(x, block_size)
    assert jnp.array_equal(out, ref), "Pallas DepthToSpace mismatch vs reference"

    print("KERNEL_OK")
</pallas_src>

<mosaic_0001>
module attributes {stable_mosaic.version = 11 : i64} {
  func.func @_d2s_kernel(%arg0: i32, %arg1: i32, %arg2: memref<1x4x64x16xf32, #tpu.memory_space<vmem>>, %arg3: memref<2x16x32xbf16, #tpu.memory_space<vmem>>, %arg4: memref<1x64x64xf32, #tpu.memory_space<vmem>>) attributes {dimension_semantics = [#tpu.dimension_semantics<parallel>, #tpu.dimension_semantics<parallel>], iteration_bounds = array<i64: 2, 1>, scalar_prefetch = 0 : i64, scratch_operands = 0 : i64, tpu.core_type = #tpu.core_type<tc>, window_params = [{transform_indices = @transform_0, window_bounds = array<i64: 1, 4, 64, 16>}, {pipeline_mode = #tpu.pipeline_mode<synchronous>, transform_indices = @transform_1, window_bounds = array<i64: 2, 16, 32>}, {transform_indices = @transform_2, window_bounds = array<i64: 1, 64, 64>}]} {
    %c0 = arith.constant 0 : index
    %c0_0 = arith.constant 0 : index
    %c0_1 = arith.constant 0 : index
    %c0_2 = arith.constant 0 : index
    %0 = vector.load %arg2[%c0, %c0_0, %c0_1, %c0_2] : memref<1x4x64x16xf32, #tpu.memory_space<vmem>>, vector<1x1x64x16xf32>
    %1 = vector.shape_cast %0 : vector<1x1x64x16xf32> to vector<64x16xf32>
    %c0_3 = arith.constant 0 : index
    %c0_4 = arith.constant 0 : index
    %c0_5 = arith.constant 0 : index
    %2 = vector.load %arg3[%c0_3, %c0_4, %c0_5] : memref<2x16x32xbf16, #tpu.memory_space<vmem>>, vector<1x16x32xbf16>
    %3 = vector.shape_cast %2 : vector<1x16x32xbf16> to vector<16x32xbf16>
    %4 = arith.truncf %1 : vector<64x16xf32> to vector<64x16xbf16>
    %5 = arith.extf %4 : vector<64x16xbf16> to vector<64x16xf32>
    %6 = arith.subf %1, %5 : vector<64x16xf32>
    %7 = arith.truncf %6 : vector<64x16xf32> to vector<64x16xbf16>
    %8 = arith.extf %7 : vector<64x16xbf16> to vector<64x16xf32>
    %9 = arith.subf %6, %8 : vector<64x16xf32>
    %10 = arith.truncf %9 : vector<64x16xf32> to vector<64x16xbf16>
    %cst = arith.constant dense<0.000000e+00> : vector<64x32xf32>
    %11 = tpu.matmul %4, %3, %cst {dimension_numbers = #tpu.dot_dimension_numbers<[1], [0], [0], [1], [0, 0, 1, 1], [], []>} : vector<64x16xbf16>, vector<16x32xbf16>, vector<64x32xf32> -> vector<64x32xf32>
    %cst_6 = arith.constant dense<0.000000e+00> : vector<64x32xf32>
    %12 = tpu.matmul %7, %3, %cst_6 {dimension_numbers = #tpu.dot_dimension_numbers<[1], [0], [0], [1], [0, 0, 1, 1], [], []>} : vector<64x16xbf16>, vector<16x32xbf16>, vector<64x32xf32> -> vector<64x32xf32>
    %13 = arith.addf %11, %12 : vector<64x32xf32>
    %cst_7 = arith.constant dense<0.000000e+00> : vector<64x32xf32>
    %14 = tpu.matmul %10, %3, %cst_7 {dimension_numbers = #tpu.dot_dimension_numbers<[1], [0], [0], [1], [0, 0, 1, 1], [], []>} : vector<64x16xbf16>, vector<16x32xbf16>, vector<64x32xf32> -> vector<64x32xf32>
    %15 = arith.addf %13, %14 : vector<64x32xf32>
    %c0_8 = arith.constant 0 : index
    %c1 = arith.constant 1 : index
    %c0_9 = arith.constant 0 : index
    %c0_10 = arith.constant 0 : index
    %16 = vector.load %arg2[%c0_8, %c1, %c0_9, %c0_10] : memref<1x4x64x16xf32, #tpu.memory_space<vmem>>, vector<1x1x64x16xf32>
    %17 = vector.shape_cast %16 : vector<1x1x64x16xf32> to vector<64x16xf32>
    %c1_11 = arith.constant 1 : index
    %c0_12 = arith.constant 0 : index
    %c0_13 = arith.constant 0 : index
    %18 = vector.load %arg3[%c1_11, %c0_12, %c0_13] : memref<2x16x32xbf16, #tpu.memory_space<vmem>>, vector<1x16x32xbf16>
    %19 = vector.shape_cast %18 : vector<1x16x32xbf16> to vector<16x32xbf16>
    %20 = arith.truncf %17 : vector<64x16xf32> to vector<64x16xbf16>
    %21 = arith.extf %20 : vector<64x16xbf16> to vector<64x16xf32>
    %22 = arith.subf %17, %21 : vector<64x16xf32>
    %23 = arith.truncf %22 : vector<64x16xf32> to vector<64x16xbf16>
    %24 = arith.extf %23 : vector<64x16xbf16> to vector<64x16xf32>
    %25 = arith.subf %22, %24 : vector<64x16xf32>
    %26 = arith.truncf %25 : vector<64x16xf32> to vector<64x16xbf16>
    %cst_14 = arith.constant dense<0.000000e+00> : vector<64x32xf32>
    %27 = tpu.matmul %20, %19, %cst_14 {dimension_numbers = #tpu.dot_dimension_numbers<[1], [0], [0], [1], [0, 0, 1, 1], [], []>} : vector<64x16xbf16>, vector<16x32xbf16>, vector<64x32xf32> -> vector<64x32xf32>
    %28 = arith.addf %15, %27 : vector<64x32xf32>
    %cst_15 = arith.constant dense<0.000000e+00> : vector<64x32xf32>
    %29 = tpu.matmul %23, %19, %cst_15 {dimension_numbers = #tpu.dot_dimension_numbers<[1], [0], [0], [1], [0, 0, 1, 1], [], []>} : vector<64x16xbf16>, vector<16x32xbf16>, vector<64x32xf32> -> vector<64x32xf32>
    %30 = arith.addf %28, %29 : vector<64x32xf32>
    %cst_16 = arith.constant dense<0.000000e+00> : vector<64x32xf32>
    %31 = tpu.matmul %26, %19, %cst_16 {dimension_numbers = #tpu.dot_dimension_numbers<[1], [0], [0], [1], [0, 0, 1, 1], [], []>} : vector<64x16xbf16>, vector<16x32xbf16>, vector<64x32xf32> -> vector<64x32xf32>
    %32 = arith.addf %30, %31 : vector<64x32xf32>
    %c0_17 = arith.constant 0 : index
    %c0_18 = arith.constant 0 : index
    %c0_19 = arith.constant 0 : index
    %33 = vector.load %arg4[%c0_17, %c0_18, %c0_19] : memref<1x64x64xf32, #tpu.memory_space<vmem>>, vector<1x64x32xf32>
    %34 = vector.shape_cast %33 : vector<1x64x32xf32> to vector<64x32xf32>
    %35 = vector.shape_cast %32 : vector<64x32xf32> to vector<1x64x32xf32>
    tpu.vector_store %arg4[%c0_17, %c0_18, %c0_19], %35 {strides = array<i32>} : memref<1x64x64xf32, #tpu.memory_space<vmem>>, vector<1x64x32xf32>,
    %c0_20 = arith.constant 0 : index
    %c2 = arith.constant 2 : index
    %c0_21 = arith.constant 0 : index
    %c0_22 = arith.constant 0 : index
    %36 = vector.load %arg2[%c0_20, %c2, %c0_21, %c0_22] : memref<1x4x64x16xf32, #tpu.memory_space<vmem>>, vector<1x1x64x16xf32>
    %37 = vector.shape_cast %36 : vector<1x1x64x16xf32> to vector<64x16xf32>
    %c0_23 = arith.constant 0 : index
    %c0_24 = arith.constant 0 : index
    %c0_25 = arith.constant 0 : index
    %38 = vector.load %arg3[%c0_23, %c0_24, %c0_25] : memref<2x16x32xbf16, #tpu.memory_space<vmem>>, vector<1x16x32xbf16>
    %39 = vector.shape_cast %38 : vector<1x16x32xbf16> to vector<16x32xbf16>
    %40 = arith.truncf %37 : vector<64x16xf32> to vector<64x16xbf16>
    %41 = arith.extf %40 : vector<64x16xbf16> to vector<64x16xf32>
    %42 = arith.subf %37, %41 : vector<64x16xf32>
    %43 = arith.truncf %42 : vector<64x16xf32> to vector<64x16xbf16>
    %44 = arith.extf %43 : vector<64x16xbf16> to vector<64x16xf32>
    %45 = arith.subf %42, %44 : vector<64x16xf32>
    %46 = arith.truncf %45 : vector<64x16xf32> to vector<64x16xbf16>
    %cst_26 = arith.constant dense<0.000000e+00> : vector<64x32xf32>
    %47 = tpu.matmul %40, %39, %cst_26 {dimension_numbers = #tpu.dot_dimension_numbers<[1], [0], [0], [1], [0, 0, 1, 1], [], []>} : vector<64x16xbf16>, vector<16x32xbf16>, vector<64x32xf32> -> vector<64x32xf32>
    %cst_27 = arith.constant dense<0.000000e+00> : vector<64x32xf32>
    %48 = tpu.matmul %43, %39, %cst_27 {dimension_numbers = #tpu.dot_dimension_numbers<[1], [0], [0], [1], [0, 0, 1, 1], [], []>} : vector<64x16xbf16>, vector<16x32xbf16>, vector<64x32xf32> -> vector<64x32xf32>
    %49 = arith.addf %47, %48 : vector<64x32xf32>
    %cst_28 = arith.constant dense<0.000000e+00> : vector<64x32xf32>
    %50 = tpu.matmul %46, %39, %cst_28 {dimension_numbers = #tpu.dot_dimension_numbers<[1], [0], [0], [1], [0, 0, 1, 1], [], []>} : vector<64x16xbf16>, vector<16x32xbf16>, vector<64x32xf32> -> vector<64x32xf32>
    %51 = arith.addf %49, %50 : vector<64x32xf32>
    %c0_29 = arith.constant 0 : index
    %c3 = arith.constant 3 : index
    %c0_30 = arith.constant 0 : index
    %c0_31 = arith.constant 0 : index
    %52 = vector.load %arg2[%c0_29, %c3, %c0_30, %c0_31] : memref<1x4x64x16xf32, #tpu.memory_space<vmem>>, vector<1x1x64x16xf32>
    %53 = vector.shape_cast %52 : vector<1x1x64x16xf32> to vector<64x16xf32>
    %c1_32 = arith.constant 1 : index
    %c0_33 = arith.constant 0 : index
    %c0_34 = arith.constant 0 : index
    %54 = vector.load %arg3[%c1_32, %c0_33, %c0_34] : memref<2x16x32xbf16, #tpu.memory_space<vmem>>, vector<1x16x32xbf16>
    %55 = vector.shape_cast %54 : vector<1x16x32xbf16> to vector<16x32xbf16>
    %56 = arith.truncf %53 : vector<64x16xf32> to vector<64x16xbf16>
    %57 = arith.extf %56 : vector<64x16xbf16> to vector<64x16xf32>
    %58 = arith.subf %53, %57 : vector<64x16xf32>
    %59 = arith.truncf %58 : vector<64x16xf32> to vector<64x16xbf16>
    %60 = arith.extf %59 : vector<64x16xbf16> to vector<64x16xf32>
    %61 = arith.subf %58, %60 : vector<64x16xf32>
    %62 = arith.truncf %61 : vector<64x16xf32> to vector<64x16xbf16>
    %cst_35 = arith.constant dense<0.000000e+00> : vector<64x32xf32>
    %63 = tpu.matmul %56, %55, %cst_35 {dimension_numbers = #tpu.dot_dimension_numbers<[1], [0], [0], [1], [0, 0, 1, 1], [], []>} : vector<64x16xbf16>, vector<16x32xbf16>, vector<64x32xf32> -> vector<64x32xf32>
    %64 = arith.addf %51, %63 : vector<64x32xf32>
    %cst_36 = arith.constant dense<0.000000e+00> : vector<64x32xf32>
    %65 = tpu.matmul %59, %55, %cst_36 {dimension_numbers = #tpu.dot_dimension_numbers<[1], [0], [0], [1], [0, 0, 1, 1], [], []>} : vector<64x16xbf16>, vector<16x32xbf16>, vector<64x32xf32> -> vector<64x32xf32>
    %66 = arith.addf %64, %65 : vector<64x32xf32>
    %cst_37 = arith.constant dense<0.000000e+00> : vector<64x32xf32>
    %67 = tpu.matmul %62, %55, %cst_37 {dimension_numbers = #tpu.dot_dimension_numbers<[1], [0], [0], [1], [0, 0, 1, 1], [], []>} : vector<64x16xbf16>, vector<16x32xbf16>, vector<64x32xf32> -> vector<64x32xf32>
    %68 = arith.addf %66, %67 : vector<64x32xf32>
    %c0_38 = arith.constant 0 : index
    %c0_39 = arith.constant 0 : index
    %c32 = arith.constant 32 : index
    %69 = vector.load %arg4[%c0_38, %c0_39, %c32] : memref<1x64x64xf32, #tpu.memory_space<vmem>>, vector<1x64x32xf32>
    %70 = vector.shape_cast %69 : vector<1x64x32xf32> to vector<64x32xf32>
    %71 = vector.shape_cast %68 : vector<64x32xf32> to vector<1x64x32xf32>
    tpu.vector_store %arg4[%c0_38, %c0_39, %c32], %71 {strides = array<i32>} : memref<1x64x64xf32, #tpu.memory_space<vmem>>, vector<1x64x32xf32>,
    return
  }
  func.func @transform_0(%arg0: i32, %arg1: i32) -> (i32, i32, i32, i32) {
    %c0_i32 = arith.constant 0 : i32
    %c0_i32_0 = arith.constant 0 : i32
    %c0_i32_1 = arith.constant 0 : i32
    return %arg0, %c0_i32, %arg1, %c0_i32_0 : i32, i32, i32, i32
  }
  func.func @transform_1(%arg0: i32, %arg1: i32) -> (i32, i32, i32) {
    %c0_i32 = arith.constant 0 : i32
    %c0_i32_0 = arith.constant 0 : i32
    %c0_i32_1 = arith.constant 0 : i32
    %c0_i32_2 = arith.constant 0 : i32
    return %c0_i32, %c0_i32_0, %c0_i32_1 : i32, i32, i32
  }
  func.func @transform_2(%arg0: i32, %arg1: i32) -> (i32, i32, i32) {
    %c0_i32 = arith.constant 0 : i32
    %c0_i32_0 = arith.constant 0 : i32
    return %arg0, %arg1, %c0_i32 : i32, i32, i32
  }
}

</mosaic_0001>

<bundles_post_ra>
// kernel: tpu_custom_call.1
= control target key start
LH: loop header
LB: loop body
LE: loop exit
PB: predicated region body
PF: predicated region fallthrough
CT: control target
= control target key end

     0   :  { %7 = vsyncpa [#allocation3], 0  ;;  %s2441_s0 = inlined_call_operand.vmem [shape: f32[2,4,64,16], index: 0, kind: input, shape index: {}]   ;;  %s2442_s1 = inlined_call_operand.vmem [shape: bf16[2,16,32], index: 1, kind: input, shape index: {}]   ;;  %s2443_s2 = inlined_call_operand.hbm [shape: f32[2,64,64], index: 2, kind: output, shape index: {}]  }
   0x1   :  { %9 = vsyncpa [#allocation3 + $0x1], 0  ;;  %s2068_s9 = smov 0   ;;  %s2070_s10 = smov 0  }
   0x2   :  { %s2072_s11 = smov 0   ;;  %s2074_s12 = smov 0  }
   0x3   :  { %s2076_s13 = smov 0   ;;  %s2078_s14 = smov 0  }
   0x4 LB: > { %s1552_s15 = sadd.s32 4294967295, %s2047_s14   ;;  %s1553_s16 = sadd.s32 4294967294, %s2047_s14   ;;  %s2047_s14 = sphi %s2078_s14, %s15_s14   ;;  %s2043_s13 = sphi %s2076_s13, %s2450_s13   ;;  %s2039_s12 = sphi %s2074_s12, %s2449_s12   ;;  %s2035_s11 = sphi %s2072_s11, %s2448_s11   ;;  %s2031_s10 = sphi %s2070_s10, %s2447_s10   ;;  %s2027_s9 = sphi %s2068_s9, %s2446_s9  }
   0x5   : > { %s27_s17 = sadd.s32 1, %s2043_s13  ;;  %s85_s18 = sadd.s32 1, %s2035_s11 }
   0x6   : > { %p29_p0 = scmp.ge.s32.totalorder %s27_s17, 2  ;;  %p95_p1 = scmp.ne.s32.totalorder %s2035_s11, %s2031_s10 }
   0x7   : > { %p96_p2 = scmp.eq.s32.totalorder %s1552_s15, 1  ;;  %p101_p3 = scmp.ne.s32.totalorder %s2031_s10, %s2027_s9 }
   0x8   : > { %s2452_s17 = smov (%p29_p0, %s27_s17), 0  ;;  %p102_p5 = scmp.eq.s32.totalorder %s1553_s16, 1 }
   0x9   : > { %p2108_p4 = por %p96_p2, %p95_p1  ;;  %s80_s20 = ssub.s32 %s2043_s13, %s2452_s17 }
   0xa   : > { %p1556_p6 = scmp.ge.s32.totalorder %s2047_s14, 1  ;;  %p83_p7 = scmp.eq.s32.totalorder %s80_s20, 0 }
   0xb   : > { %p2115_p8 = por %p102_p5, %p101_p3  ;;  %p136_p9 = scmp.lt.s32.totalorder %s2047_s14, 3 }
   0xc   : > { %s2121_s22 = scalar_select %p83_p7, %s2035_s11, %s85_s18  }
   0xd   : > { %p137_p10 = pnand %p1556_p6, %p136_p9 }
   0xe   : > { %v2126_v0 = vld [vmem:[%s2442_s1] sm:$0xff] (!%p137_p10)   ;;  %p163_p11 = scmp.lt.s32.totalorder (!%p137_p10), %s2039_s12, 1  ;;  %vm234_vm0 = vcmask (!%p137_p10), 130048   ;;  %s2049_s8 = smov (!%p137_p10), 32   ;;  %vm791_vm1 = vcmask (!%p137_p10), 261120   ;;  %vm1448_vm2 = vcmask (!%p137_p10), 523520  }
   0xf   : > { %140 = sbr.rel (%p137_p10) target bundleno = 473 (0x1d9), region = 28  ;;  %v2132_v1 = vld [vmem:[%s2442_s1] sm:$0xff] (!%p137_p10)   ;;  %1767 = vmatprep.subr.bf16.mxu1 (!%p137_p10), %v2126_v0  ;;  %s159_s15 = sand.u32 (!%p137_p10), 1, %s2031_s10  }
  0x10   : > { %1768 = vmatpush3.bf16.msra.mxu1 (!%p137_p10), %v2126_v0  ;;  %1707 = vmatprep.subr.bf16.mxu0 (!%p137_p10), %v2132_v1  ;;  %s1557_s16 = sshll.u32 (!%p137_p10), %s159_s15, 6  ;;  %s1646_s20 = sshll.u32 (!%p137_p10), %s2039_s12, 10 }
  0x11   : > { %1777 = vmatprep.subr.bf16.mxu1 (!%p137_p10), %v2126_v0  ;;  %1708 = vmatpush3.bf16.msra.mxu0 (!%p137_p10), %v2132_v1  ;;  %s2350_s18 = scalar_lea.vmem (!%p137_p10), [#allocation2], %s1557_s16  ;;  %s2385_s26 = scalar_lea.hbm (!%p137_p10), %s2443_s2, %s1646_s20 }
  0x12   : > { %1717 = vmatprep.subr.bf16.mxu0 (!%p137_p10), %v2132_v1  ;;  %s1473_s23 = sshll.u32 (!%p137_p10), %s2350_s18, 4  ;;  %s2387_s23 = int_to_ptr.vmem [resolvable:$true] %s1473_s23 }
  0x16   : > { %s164_s27 = scalar_select %p163_p11, %s2039_s12, 1 }
  0x17   : > { %s2395_s12 = scalar_lea.sflag [#allocation3], %s159_s15 }
  0x18   : > { %s1645_s28 = sshll.u32 %s164_s27, 8  ;;  %s1969_s27 = scalar_lea.vmem %s2387_s23, 1024 }
  0x19   : > { %s2143_s3 = scalar_lea.vmem %s2441_s0, %s1645_s28  ;;  %p1970_p12 = scmp.ne.s32.totalorder %s2387_s23, %s1969_s27 }
  0x1a   : > { %v1596_v2 = vld [vmem:[%s2143_s3 + $0x80] sm:$0xff]  ;;  %v1597_v3 = vld [vmem:[%s2143_s3 + $0x88] sm:$0xff]  ;;  %v1598_v4 = vld [vmem:[%s2143_s3 + $0x90] sm:$0xff]  ;;  %s2050_s28 = smov [#allocation2]  }
  0x1b   : > { %v811_v5 = vpack.c.bf16 %v1597_v3, %v1596_v2  ;;  %v1599_v6 = vld [vmem:[%s2143_s3 + $0x98] sm:$0xff]  ;;  %v1600_v7 = vld [vmem:[%s2143_s3 + $0xa0] sm:$0xff]  ;;  %v1601_v8 = vld [vmem:[%s2143_s3 + $0xa8] sm:$0xff]  ;;  %p1971_p13 = pnand %p1970_p12, %p2108_p4  ;;  %s1973_s29 = sshll.u32 %s2050_s28, 4  ;;  %s1974_s29 = int_to_ptr.vmem [resolvable:$false] %s1973_s29 }
  0x1c   : > { %v2152_v9 = vpack.c.bf16 %v1599_v6, %v1598_v4  ;;  %v2154_v10 = vpack.c.bf16 %v1601_v8, %v1600_v7  ;;  %v1602_v11 = vld [vmem:[%s2143_s3 + $0xb0] sm:$0xff]  ;;  %v1603_v12 = vld [vmem:[%s2143_s3 + $0xb8] sm:$0xff]  ;;  %v174_v20 = vld [vmem:[%s2143_s3] sm:$0xff]  ;;  %s1975_s30 = scalar_lea.vmem %s1974_s29, 2048  ;;  %p1976_p1 = scmp.lt.s32.totalorder %s2387_s23, %s1974_s29 }
  0x1d   : > { %v815_v13 = vunpack.c.l.bf16 %v811_v5  ;;  %v816_v14 = vunpack.c.h.bf16 %v811_v5  ;;  %v2158_v15 = vpack.c.bf16 %v1603_v12, %v1602_v11  ;;  %v175_v21 = vld [vmem:[%s2143_s3 + $0x8] sm:$0xff]  ;;  %v176_v26 = vld [vmem:[%s2143_s3 + $0x10] sm:$0xff]  ;;  %v177_v27 = vld [vmem:[%s2143_s3 + $0x18] sm:$0xff]  ;;  %p1972_p0 = pneg %p1971_p13  ;;  %p1977_p2 = scmp.lt.s32.totalorder %s1975_s30, %s1969_s27 }
  0x1e   : > { %v817_v16 = vunpack.c.l.bf16 %v2152_v9  ;;  %v818_v17 = vunpack.c.h.bf16 %v2152_v9  ;;  %v819_v18 = vunpack.c.l.bf16 %v2154_v10  ;;  %v820_v19 = vunpack.c.h.bf16 %v2154_v10  ;;  %v178_v37 = vld [vmem:[%s2143_s3 + $0x20] sm:$0xff]  ;;  %v179_v38 = vld [vmem:[%s2143_s3 + $0x28] sm:$0xff]  ;;  %v180_v54 = vld [vmem:[%s2143_s3 + $0x30] sm:$0xff] }
  0x1f   : > { %v823_v22 = vsub.f32 %v1596_v2, %v815_v13  ;;  %v824_v23 = vsub.f32 %v1597_v3, %v816_v14  ;;  %v821_v24 = vunpack.c.l.bf16 %v2158_v15  ;;  %v822_v25 = vunpack.c.h.bf16 %v2158_v15  ;;  %v181_v55 = vld [vmem:[%s2143_s3 + $0x38] sm:$0xff]  ;;  %p1978_p3 = por %p1977_p2, %p1976_p1 }
  0x20   : > { %v2170_v28 = vsub.f32 %v1598_v4, %v817_v16  ;;  %v2172_v29 = vsub.f32 %v1599_v6, %v818_v17  ;;  %v2174_v30 = vsub.f32 %v1600_v7, %v819_v18  ;;  %v2176_v31 = vsub.f32 %v1601_v8, %v820_v19  ;;  %v2265_v18 = vld [vmem:[%s2442_s1 + $0x8] sm:$0xff]  }
  0x21   : > { %v831_v32 = vpack.c.bf16 %v824_v23, %v823_v22  ;;  %v184_v33 = vpack.c.bf16 %v175_v21, %v174_v20  ;;  %v2186_v36 = vpack.c.bf16 %v177_v27, %v176_v26  ;;  %v2193_v40 = vsub.f32 %v1602_v11, %v821_v24  ;;  %p1979_p5 = pnand %p1978_p3, %p1972_p0 }
  0x22   : > { %v2180_v34 = vpack.c.bf16 %v2172_v29, %v2170_v28  ;;  %v2184_v35 = vpack.c.bf16 %v2176_v31, %v2174_v30  ;;  %v2195_v41 = vsub.f32 %v1603_v12, %v822_v25  ;;  %v186_v46 = vpack.c.bf16 %v179_v38, %v178_v37 }
  0x23   : > { %1769 = vmatprep.mubr.msk.bf16.mxu1 %vm234_vm0, %v831_v32  ;;  %v188_v39 = vunpack.c.l.bf16 %v184_v33  ;;  %v189_v42 = vunpack.c.h.bf16 %v184_v33  ;;  %v190_v43 = vunpack.c.l.bf16 %v2186_v36  ;;  %v191_v45 = vunpack.c.h.bf16 %v2186_v36 }
  0x24   : > { %1770 = vmatmul.mubr.msk.bf16.vlgmr.msra.gmra.mrb[0].mxu1 %vm234_vm0, %v2180_v34  ;;  %v2209_v50 = vpack.c.bf16 %v2195_v41, %v2193_v40  ;;  %v192_v53 = vunpack.c.l.bf16 %v186_v46  ;;  %v193_v56 = vunpack.c.h.bf16 %v186_v46  ;;  %v187_v59 = vpack.c.bf16 %v181_v55, %v180_v54 }
  0x25   : > { %1778 = vmatpush3.bf16.msra.mxu1 %v2126_v0  ;;  %1773 = vmatprep.mubr.msk.bf16.mxu1 %vm234_vm0, %v2184_v35  ;;  %v196_v44 = vsub.f32 %v174_v20, %v188_v39  ;;  %v197_v47 = vsub.f32 %v175_v21, %v189_v42  ;;  %v2203_v48 = vsub.f32 %v176_v26, %v190_v43  ;;  %v835_v63 = vunpack.c.l.bf16 %v831_v32 }
  0x26   : > { %1787 = vmatprep.subr.bf16.mxu1 %v2126_v0  ;;  %v2205_v49 = vsub.f32 %v177_v27, %v191_v45  ;;  %v2222_v57 = vsub.f32 %v178_v37, %v192_v53  ;;  %v2225_v58 = vsub.f32 %v179_v38, %v193_v56  ;;  %v194_v61 = vunpack.c.l.bf16 %v187_v59  ;;  %v1620_v45 = vld [vmem:[%s2143_s3 + $0xd8] sm:$0xff] }
  0x27   : > { %v204_v51 = vpack.c.bf16 %v197_v47, %v196_v44  ;;  %v195_v62 = vunpack.c.h.bf16 %v187_v59  ;;  %v836_v2 = vunpack.c.h.bf16 %v831_v32  ;;  %v843_v7 = vsub.f32 %v823_v22, %v835_v63  ;;  %v1576_v63 = vld [vmem:[%s2143_s3 + $0x58] sm:$0xff] }
  0x28   : > { %v2213_v52 = vpack.c.bf16 %v2205_v49, %v2203_v48  ;;  %v206_v60 = vpack.c.bf16 %v2225_v58, %v2222_v57  ;;  %v2232_v3 = vsub.f32 %v180_v54, %v194_v61  ;;  %v837_v11 = vunpack.c.l.bf16 %v2180_v34 }
  0x29   : > { %1709 = vmatprep.mubr.msk.bf16.mxu0 %vm234_vm0, %v204_v51  ;;  %v2234_v4 = vsub.f32 %v181_v55, %v195_v62  ;;  %v844_v8 = vsub.f32 %v824_v23, %v836_v2  ;;  %v838_v12 = vunpack.c.h.bf16 %v2180_v34  ;;  %v840_v14 = vunpack.c.h.bf16 %v2184_v35  ;;  %v1617_v34 = vld [vmem:[%s2143_s3 + $0xc0] sm:$0xff]  ;;  %v1575_v62 = vld [vmem:[%s2143_s3 + $0x50] sm:$0xff] }
  0x2a   : > { %1710 = vmatmul.mubr.msk.bf16.vlgmr.msra.gmra.mrb[0].mxu0 %vm234_vm0, %v2213_v52  ;;  %v209_v16 = vunpack.c.h.bf16 %v204_v51  ;;  %v841_v23 = vunpack.c.l.bf16 %v2209_v50  ;;  %v842_v24 = vunpack.c.h.bf16 %v2209_v50  ;;  %v210_v26 = vunpack.c.l.bf16 %v2213_v52 }
  0x2b   : > { %1718 = vmatpush3.bf16.msra.mxu0 %v2132_v1  ;;  %1713 = vmatprep.mubr.msk.bf16.mxu0 %vm234_vm0, %v206_v60  ;;  %v2243_v6 = vpack.c.bf16 %v2234_v4, %v2232_v3  ;;  %v851_v13 = vpack.c.bf16 %v844_v8, %v843_v7  ;;  %v846_v17 = vsub.f32 %v2172_v29, %v838_v12  ;;  %v211_v27 = vunpack.c.h.bf16 %v2213_v52  ;;  %v1574_v52 = vld [vmem:[%s2143_s3 + $0x48] sm:$0xff] }
  0x2c   : > { %1774 = vmatmul.mubr.msk.bf16.gmra.mrb[4].mxu1 %vm234_vm0, %v2209_v50  ;;  %1727 = vmatprep.subr.bf16.mxu0 %v2132_v1  ;;  %v848_v20 = vsub.f32 %v2176_v31, %v840_v14  ;;  %v217_v22 = vsub.f32 %v197_v47, %v209_v16  ;;  %v212_v29 = vunpack.c.l.bf16 %v206_v60  ;;  %v850_v31 = vsub.f32 %v2195_v41, %v842_v24  ;;  %v1622_v47 = vld [vmem:[%s2143_s3 + $0xe8] sm:$0xff] }
  0x2d   : > { %1779 = vmatprep.mubr.msk.bf16.mxu1 %vm234_vm0, %v811_v5  ;;  %v2239_v5 = vld [vmem:[%s2442_s1 + $0x8] sm:$0xff]   ;;  %v218_v32 = vsub.f32 %v2203_v48, %v210_v26  ;;  %v214_v41 = vunpack.c.l.bf16 %v2243_v6  ;;  %v215_v42 = vunpack.c.h.bf16 %v2243_v6 }
  0x2e   : > { %v1578_v7 = vld [vmem:[%s2143_s3 + $0x68] sm:$0xff] }
  0x2f   : > { %v222_v48 = vsub.f32 %v2232_v3, %v214_v41 }
  0x32   : > { %1714 = vmatmul.mubr.msk.bf16.gmra.mrb[4].mxu0 %vm234_vm0, %v2243_v6  ;;  %v1577_v6 = vld [vmem:[%s2143_s3 + $0x60] sm:$0xff] }
  0x33   : > { %1719 = vmatprep.mubr.msk.bf16.mxu0 %vm234_vm0, %v184_v33  ;;  %v219_v33 = vsub.f32 %v2205_v49, %v211_v27  ;;  %v223_v49 = vsub.f32 %v2234_v4, %v215_v42 }
  0x34   : > { %1780 = vmatmul.mubr.msk.bf16.vlgmr.msra.gmra.mrb[0].mxu1 %vm234_vm0, %v2152_v9  ;;  %v839_v9 = vunpack.c.l.bf16 %v2184_v35  ;;  %v1618_v35 = vld [vmem:[%s2143_s3 + $0xc8] sm:$0xff] }
  0x35   : > { %1788 = vmatpush3.bf16.msra.mxu1 %v2126_v0  ;;  %1783 = vmatprep.mubr.msk.bf16.mxu1 %vm234_vm0, %v2154_v10  ;;  %v208_v0 = vunpack.c.l.bf16 %v204_v51  ;;  %v845_v10 = vsub.f32 %v2170_v28, %v837_v11  ;;  %v1111_v39 = vpack.c.bf16 %v1618_v35, %v1617_v34  ;;  %v1573_v51 = vld [vmem:[%s2143_s3 + $0x40] sm:$0xff]  ;;  %v227_v56 = vpack.c.bf16 %v223_v49, %v222_v48 }
  0x36   : > { %1797 = vmatprep.subr.bf16.mxu1 %v2239_v5  ;;  %v847_v19 = vsub.f32 %v2174_v30, %v839_v9  ;;  %v213_v30 = vunpack.c.h.bf16 %v206_v60  ;;  %v488_v9 = vpack.c.bf16 %v1578_v7, %v1577_v6 }
  0x37   : > { %v216_v21 = vsub.f32 %v196_v44, %v208_v0  ;;  %v1619_v44 = vld [vmem:[%s2143_s3 + $0xd0] sm:$0xff]  ;;  %v1115_v54 = vunpack.c.l.bf16 %v1111_v39  ;;  %v1116_v55 = vunpack.c.h.bf16 %v1111_v39 }
  0x38   : > { %v853_v25 = vpack.c.bf16 %v848_v20, %v847_v19  ;;  %v221_v37 = vsub.f32 %v2225_v58, %v213_v30  ;;  %v1112_v50 = vpack.c.bf16 %v1620_v45, %v1619_v44  ;;  %v1623_v58 = vld [vmem:[%s2143_s3 + $0xf0] sm:$0xff] }
  0x39   : > { %v224_v28 = vpack.c.bf16 %v217_v22, %v216_v21  ;;  %v1123_v60 = vsub.f32 %v1617_v34, %v1115_v54  ;;  %v1124_v61 = vsub.f32 %v1618_v35, %v1116_v55  ;;  %v1579_v20 = vld [vmem:[%s2143_s3 + $0x70] sm:$0xff]  ;;  %v1580_v21 = vld [vmem:[%s2143_s3 + $0x78] sm:$0xff] }
  0x3a   : > { %1720 = vmatmul.mubr.msk.bf16.vlgmr.msra.gmra.mrb[0].mxu0 %vm234_vm0, %v2186_v36  ;;  %v220_v36 = vsub.f32 %v2222_v57, %v212_v29  ;;  %v486_v57 = vpack.c.bf16 %v1574_v52, %v1573_v51  ;;  %v1117_v3 = vunpack.c.l.bf16 %v1112_v50  ;;  %v1118_v4 = vunpack.c.h.bf16 %v1112_v50 }
  0x3b   : > { %1723 = vmatprep.mubr.msk.bf16.mxu0 %vm234_vm0, %v186_v46  ;;  %1728 = vmatpush3.bf16.msra.mxu0 %v2132_v1  ;;  %v849_v1 = vsub.f32 %v2193_v40, %v841_v23  ;;  %v225_v40 = vpack.c.bf16 %v219_v33, %v218_v32  ;;  %v1621_v46 = vld [vmem:[%s2143_s3 + $0xe0] sm:$0xff]  ;;  %v1131_v8 = vpack.c.bf16 %v1124_v61, %v1123_v60  ;;  %v494_v32 = vunpack.c.l.bf16 %v488_v9 }
  0x3c   : > { %1784 = vmatmul.mubr.msk.bf16.gmra.mrb[4].mxu1 %vm234_vm0, %v2158_v15  ;;  %v852_v15 = vpack.c.bf16 %v846_v17, %v845_v10  ;;  %1737 = vmatprep.subr.bf16.mxu0 %v2265_v18  ;;  %v226_v43 = vpack.c.bf16 %v221_v37, %v220_v36  ;;  %v1113_v53 = vpack.c.bf16 %v1622_v47, %v1621_v46  ;;  %v490_v14 = vunpack.c.l.bf16 %v486_v57 }
  0x3d   : > { %1789 = vmatprep.mubr.msk.bf16.mxu1 %vm234_vm0, %v851_v13  ;;  %v854_v38 = vpack.c.bf16 %v850_v31, %v849_v1  ;;  %v487_v13 = vpack.c.bf16 %v1576_v63, %v1575_v62  ;;  %v491_v0 = vunpack.c.h.bf16 %v486_v57  ;;  %v1125_v16 = vsub.f32 %v1619_v44, %v1117_v3 }
  0x3e   : > { %v1119_v11 = vunpack.c.l.bf16 %v1113_v53  ;;  %v1120_v12 = vunpack.c.h.bf16 %v1113_v53  ;;  %v1126_v10 = vsub.f32 %v1620_v45, %v1118_v4  ;;  %v498_v22 = vsub.f32 %v1573_v51, %v490_v14 }
  0x3f   : > { %v1135_v27 = vunpack.c.l.bf16 %v1131_v8  ;;  %v489_v29 = vpack.c.bf16 %v1580_v21, %v1579_v20  ;;  %v492_v30 = vunpack.c.l.bf16 %v487_v13  ;;  %v493_v1 = vunpack.c.h.bf16 %v487_v13 }
  0x40   : > { %v1127_v17 = vsub.f32 %v1621_v46, %v1119_v11  ;;  %v1128_v19 = vsub.f32 %v1622_v47, %v1120_v12  ;;  %v1132_v23 = vpack.c.bf16 %v1126_v10, %v1125_v16  ;;  %v495_v33 = vunpack.c.h.bf16 %v488_v9 }
  0x41   : > { %v1143_v36 = vsub.f32 %v1123_v60, %v1135_v27  ;;  %v497_v49 = vunpack.c.h.bf16 %v489_v29 }
  0x42   : > { %1724 = vmatmul.mubr.msk.bf16.gmra.mrb[4].mxu0 %vm234_vm0, %v187_v59  ;;  %v1624_v59 = vld [vmem:[%s2143_s3 + $0xf8] sm:$0xff]  ;;  %v1133_v26 = vpack.c.bf16 %v1128_v19, %v1127_v17  ;;  %v503_v41 = vsub.f32 %v1578_v7, %v495_v33  ;;  %v1138_v44 = vunpack.c.h.bf16 %v1132_v23 }
  0x43   : > { %1729 = vmatprep.mubr.msk.bf16.mxu0 %vm234_vm0, %v224_v28  ;;  %v1114_v2 = vpack.c.bf16 %v1624_v59, %v1623_v58  ;;  %v1136_v28 = vunpack.c.h.bf16 %v1131_v8 }
  0x44   : > { %1790 = vmatmul.mubr.msk.bf16.vlgmr.msra.gmra.mrb[0].mxu1 %vm234_vm0, %v852_v15  ;;  %v499_v15 = vsub.f32 %v1574_v52, %v491_v0  ;;  %v1139_v46 = vunpack.c.l.bf16 %v1133_v26  ;;  %v1140_v47 = vunpack.c.h.bf16 %v1133_v26  ;;  %v1146_v54 = vsub.f32 %v1126_v10, %v1138_v44 }
  0x45   : > { %1798 = vmatpush3.bf16.msra.mxu1 %v2239_v5  ;;  %1793 = vmatprep.mubr.msk.bf16.mxu1 %vm234_vm0, %v853_v25  ;;  %v1121_v24 = vunpack.c.l.bf16 %v1114_v2  ;;  %v1122_v25 = vunpack.c.h.bf16 %v1114_v2  ;;  %v1144_v37 = vsub.f32 %v1124_v61, %v1136_v28 }
  0x46   : > { %1807 = vmatprep.subr.bf16.mxu1 %v2239_v5  ;;  %v506_v31 = vpack.c.bf16 %v499_v15, %v498_v22  ;;  %v1147_v55 = vsub.f32 %v1127_v17, %v1139_v46 }
  0x47   : > { %v1129_v34 = vsub.f32 %v1623_v58, %v1121_v24  ;;  %v1130_v35 = vsub.f32 %v1624_v59, %v1122_v25  ;;  %v1151_v45 = vpack.c.bf16 %v1144_v37, %v1143_v36  ;;  %v505_v58 = vsub.f32 %v1580_v21, %v497_v49 }
  0x48   : > { %v510_v51 = vunpack.c.l.bf16 %v506_v31  ;;  %v511_v52 = vunpack.c.h.bf16 %v506_v31 }
  0x49   : > { %v1134_v42 = vpack.c.bf16 %v1130_v35, %v1129_v34 }
  0x4a   : > { %1730 = vmatmul.mubr.msk.bf16.vlgmr.msra.gmra.mrb[0].mxu0 %vm234_vm0, %v225_v40  ;;  %v502_v40 = vsub.f32 %v1577_v6, %v494_v32  ;;  %v518_v59 = vsub.f32 %v498_v22, %v510_v51  ;;  %v519_v60 = vsub.f32 %v499_v15, %v511_v52 }
  0x4b   : > { %1733 = vmatprep.mubr.msk.bf16.mxu0 %vm234_vm0, %v226_v43  ;;  %1738 = vmatpush3.bf16.msra.mxu0 %v2265_v18  ;;  %v1137_v43 = vunpack.c.l.bf16 %v1132_v23 }
  0x4c   : > { %1794 = vmatmul.mubr.msk.bf16.gmra.mrb[4].mxu1 %vm234_vm0, %v854_v38  ;;  %1747 = vmatprep.subr.bf16.mxu0 %v2265_v18  ;;  %v500_v38 = vsub.f32 %v1575_v62, %v492_v30  ;;  %v1141_v62 = vunpack.c.l.bf16 %v1134_v42  ;;  %v526_v7 = vpack.c.bf16 %v519_v60, %v518_v59 }
  0x4d   : > { %1799 = vmatprep.mubr.msk.bf16.mxu1 %vm234_vm0, %v1111_v39  ;;  %v501_v39 = vsub.f32 %v1576_v63, %v493_v1  ;;  %v1142_v63 = vunpack.c.h.bf16 %v1134_v42 }
  0x4e   : > { %v1149_v12 = vsub.f32 %v1129_v34, %v1141_v62 }
  0x4f   : > { %v507_v48 = vpack.c.bf16 %v501_v39, %v500_v38 }
  0x51   : > { %v512_v4 = vunpack.c.l.bf16 %v507_v48  ;;  %v513_v6 = vunpack.c.h.bf16 %v507_v48 }
  0x52   : > { %1734 = vmatmul.mubr.msk.bf16.gmra.mrb[4].mxu0 %vm234_vm0, %v227_v56  ;;  %v1148_v56 = vsub.f32 %v1128_v19, %v1140_v47 }
  0x53   : > { %1739 = vmatprep.mubr.msk.bf16.mxu0 %vm234_vm0, %v486_v57 }
  0x54   : > { %1800 = vmatmul.mubr.msk.bf16.vlgmr.msra.gmra.mrb[0].mxu1 %vm234_vm0, %v1112_v50  ;;  %v508_v50 = vpack.c.bf16 %v503_v41, %v502_v40 }
  0x55   : > { %1808 = vmatpush3.bf16.msra.mxu1 %v2239_v5  ;;  %1803 = vmatprep.mubr.msk.bf16.mxu1 %vm234_vm0, %v1113_v53  ;;  %v1145_v53 = vsub.f32 %v1125_v16, %v1137_v43 }
  0x56   : > { %1817 = vmatprep.subr.bf16.mxu1 %v2239_v5  ;;  %v515_v11 = vunpack.c.h.bf16 %v508_v50 }
  0x57   : > { %v1152_v61 = vpack.c.bf16 %v1146_v54, %v1145_v53 }
  0x58   : > { %v523_v0 = vsub.f32 %v503_v41, %v515_v11 }
  0x5a   : > { %1740 = vmatmul.mubr.msk.bf16.vlgmr.msra.gmra.mrb[0].mxu0 %vm234_vm0, %v487_v13  ;;  %v1150_v13 = vsub.f32 %v1130_v35, %v1142_v63 }
  0x5b   : > { %1743 = vmatprep.mubr.msk.bf16.mxu0 %vm234_vm0, %v488_v9  ;;  %1748 = vmatpush3.bf16.msra.mxu0 %v2265_v18  ;;  %v521_v9 = vsub.f32 %v501_v39, %v513_v6 }
  0x5c   : > { %1804 = vmatmul.mubr.msk.bf16.gmra.mrb[4].mxu1 %vm234_vm0, %v1114_v2  ;;  %1757 = vmatprep.subr.bf16.mxu0 %v2265_v18  ;;  %v1153_v2 = vpack.c.bf16 %v1148_v56, %v1147_v55  ;;  %v1154_v16 = vpack.c.bf16 %v1150_v13, %v1149_v12 }
  0x5d   : > { %1809 = vmatprep.mubr.msk.bf16.mxu1 %vm234_vm0, %v1131_v8  ;;  %v514_v8 = vunpack.c.l.bf16 %v508_v50 }
  0x5f   : > { %v522_v14 = vsub.f32 %v502_v40, %v514_v8 }
  0x62   : > { %1744 = vmatmul.mubr.msk.bf16.gmra.mrb[4].mxu0 %vm234_vm0, %v489_v29 }
  0x63   : > { %1749 = vmatprep.mubr.msk.bf16.mxu0 %vm234_vm0, %v506_v31 }
  0x64   : > { %1810 = vmatmul.mubr.msk.bf16.vlgmr.msra.gmra.mrb[0].mxu1 %vm234_vm0, %v1132_v23 }
  0x65   : > { %1818 = vmatpush3.bf16.msra.mxu1 %v2239_v5  ;;  %1813 = vmatprep.mubr.msk.bf16.mxu1 %vm234_vm0, %v1133_v26  ;;  %v496_v5 = vunpack.c.l.bf16 %v489_v29 }
  0x67   : > { %v504_v57 = vsub.f32 %v1579_v20, %v496_v5  ;;  %v528_v20 = vpack.c.bf16 %v523_v0, %v522_v14 }
  0x69   : > { %v509_v3 = vpack.c.bf16 %v505_v58, %v504_v57 }
  0x6a   : > { %1750 = vmatmul.mubr.msk.bf16.vlgmr.msra.gmra.mrb[0].mxu0 %vm234_vm0, %v507_v48 }
  0x6b   : > { %1753 = vmatprep.mubr.msk.bf16.mxu0 %vm234_vm0, %v508_v50  ;;  %1758 = vmatpush3.bf16.msra.mxu0 %v2265_v18  ;;  %v520_v18 = vsub.f32 %v500_v38, %v512_v4  ;;  %v516_v17 = vunpack.c.l.bf16 %v509_v3  ;;  %v517_v19 = vunpack.c.h.bf16 %v509_v3 }
  0x6c   : > { %1814 = vmatmul.mubr.msk.bf16.gmra.mrb[4].mxu1 %vm234_vm0, %v1134_v42 }
  0x6d   : > { %1819 = vmatprep.mubr.msk.bf16.mxu1 %vm234_vm0, %v1151_v45  ;;  %v527_v10 = vpack.c.bf16 %v521_v9, %v520_v18  ;;  %v524_v21 = vsub.f32 %v504_v57, %v516_v17  ;;  %v525_v22 = vsub.f32 %v505_v58, %v517_v19 }
  0x6f   : > { %v529_v15 = vpack.c.bf16 %v525_v22, %v524_v21 }
  0x72   : > { %1754 = vmatmul.mubr.msk.bf16.gmra.mrb[4].mxu0 %vm234_vm0, %v509_v3 }
  0x73   : > { %1759 = vmatprep.mubr.msk.bf16.mxu0 %vm234_vm0, %v526_v7 }
  0x74   : > { %1820 = vmatmul.mubr.msk.bf16.vlgmr.msra.gmra.mrb[0].mxu1 %vm234_vm0, %v1152_v61 }
  0x75   : > { %1823 = vmatprep.mubr.msk.bf16.mxu1 %vm234_vm0, %v1153_v2 }
  0x7a   : > { %1760 = vmatmul.mubr.msk.bf16.vlgmr.msra.gmra.mrb[0].mxu0 %vm234_vm0, %v527_v10 }
  0x7b   : > { %1763 = vmatprep.mubr.msk.bf16.mxu0 %vm234_vm0, %v528_v20 }
  0x7c   : > { %1824 = vmatmul.mubr.msk.bf16.gmra.mrb[4].mxu1 %vm234_vm0, %v1154_v16 }
  0x82   : > { %1764 = vmatmul.mubr.msk.bf16.gmra.mrb[4].mxu0 %vm234_vm0, %v529_v15 }
 0x147   : > { %v1821_v23 = vpop.f32.mrb[0].mxu1 }
 0x148   : > { %1428 = vrot.lane.b32.xlu1 %v1821_v23, %s2049_s8  ;;  %v1377_v24 = vpop.f32.mrb[1].mxu1 }
 0x149   : > { %1424 = vrot.lane.b32.xlu0 %v1377_v24, %s2049_s8  ;;  %v1822_v25 = vpop.f32.mrb[2].mxu1 }
 0x14a   : > { %v1380_v26 = vpop.f32.mrb[3].mxu1 }
 0x14c   : > { %1430 = vrot.lane.b32.xlu1 %v1822_v25, %s2049_s8 }
 0x14d   : > { %1426 = vrot.lane.b32.xlu0 %v1380_v26, %s2049_s8  ;;  %v1761_v30 = vpop.f32.mrb[0].mxu0 }
 0x14e   : > { %794 = vst.msk [vmem:[%s2350_s18 + $0x10] sm:$0xff] %vm791_vm1, %v1761_v30  ;;  %v752_v31 = vpop.f32.mrb[1].mxu0 }
 0x14f   : > { %v1825_v27 = vpop.f32.mrb[4].mxu1  ;;  %792 = vst.msk [vmem:[%s2350_s18] sm:$0xff] %vm791_vm1, %v752_v31  ;;  %v1762_v32 = vpop.f32.mrb[2].mxu0 }
 0x150   : > { %v1393_v28 = vpop.f32.mrb[5].mxu1  ;;  %795 = vst.msk [vmem:[%s2350_s18 + $0x18] sm:$0xff] %vm791_vm1, %v1762_v32  ;;  %v755_v33 = vpop.f32.mrb[3].mxu0 }
 0x151   : > { %1432 = vrot.lane.b32.xlu0 %v1393_v28, %s2049_s8  ;;  %v1826_v29 = vpop.f32.mrb[6].mxu1  ;;  %793 = vst.msk [vmem:[%s2350_s18 + $0x8] sm:$0xff] %vm791_vm1, %v755_v33 }
 0x152   : > { %v1396_v1 = vpop.f32.mrb[7].mxu1 }
 0x153   : > { %1434 = vrot.lane.b32.xlu1 %v1396_v1, %s2049_s8 }
 0x155   : > { %1436 = vrot.lane.b32.xlu0 %v1825_v27, %s2049_s8  ;;  %v1765_v34 = vpop.f32.mrb[4].mxu0 }
 0x156   : > { %798 = vst.msk [vmem:[%s2350_s18 + $0x30] sm:$0xff] %vm791_vm1, %v1765_v34  ;;  %v768_v35 = vpop.f32.mrb[5].mxu0 }
 0x157   : > { %1438 = vrot.lane.b32.xlu1 %v1826_v29, %s2049_s8  ;;  %796 = vst.msk [vmem:[%s2350_s18 + $0x20] sm:$0xff] %vm791_vm1, %v768_v35  ;;  %v1766_v36 = vpop.f32.mrb[6].mxu0 }
 0x158   : > { %799 = vst.msk [vmem:[%s2350_s18 + $0x38] sm:$0xff] %vm791_vm1, %v1766_v36  ;;  %v771_v37 = vpop.f32.mrb[7].mxu0 }
 0x159   : > { %797 = vst.msk [vmem:[%s2350_s18 + $0x28] sm:$0xff] %vm791_vm1, %v771_v37 }
 0x1ba   : > { %v1429_v38 = vpop.permute.xlu1 %1428 }
 0x1bb   : > { %1451 = vst.msk [vmem:[%s2350_s18 + $0x10] sm:$0xff] %vm1448_vm2, %v1429_v38  ;;  %v1425_v39 = vpop.permute.xlu0 %1424 }
 0x1bc   : > { %1449 = vst.msk [vmem:[%s2350_s18] sm:$0xff] %vm1448_vm2, %v1425_v39 }
 0x1be   : > { %v1431_v40 = vpop.permute.xlu1 %1430 }
 0x1bf   : > { %1452 = vst.msk [vmem:[%s2350_s18 + $0x18] sm:$0xff] %vm1448_vm2, %v1431_v40  ;;  %v1427_v41 = vpop.permute.xlu0 %1426 }
 0x1c0   : > { %1450 = vst.msk [vmem:[%s2350_s18 + $0x8] sm:$0xff] %vm1448_vm2, %v1427_v41 }
 0x1c3   : > { %v1433_v42 = vpop.permute.xlu0 %1432 }
 0x1c4   : > { %1453 = vst.msk [vmem:[%s2350_s18 + $0x20] sm:$0xff] %vm1448_vm2, %v1433_v42 }
 0x1c5   : > { %v1435_v43 = vpop.permute.xlu1 %1434 }
 0x1c6   : > { %1454 = vst.msk [vmem:[%s2350_s18 + $0x28] sm:$0xff] %vm1448_vm2, %v1435_v43 }
 0x1c7   : > { %v1437_v44 = vpop.permute.xlu0 %1436 }
 0x1c8   : > { %1455 = vst.msk [vmem:[%s2350_s18 + $0x30] sm:$0xff] %vm1448_vm2, %v1437_v44 }
 0x1c9   : > { %v1439_v45 = vpop.permute.xlu1 %1438 }
 0x1ca   : > { %1456 = vst.msk [vmem:[%s2350_s18 + $0x38] sm:$0xff] %vm1448_vm2, %v1439_v45 }
 0x1cb   : > { %1982 = shalt.err (!%p1979_p5)
}
 0x1cc   : > { %s1983_s3 = scalar_lea.hbm %s2385_s26, 1024  ;;  %s1987_s6 = scalar_lea.hbm %s2443_s2, 2048 }
 0x1cd   : > { %p1984_p6 = scmp.ne.s32.totalorder %s2385_s26, %s1983_s3  ;;  %p1988_p10 = scmp.lt.u32.totalorder %s2385_s26, %s2443_s2 }
 0x1ce   : > { %p1989_p11 = scmp.lt.u32.totalorder %s1987_s6, %s1983_s3  ;;  %p1991_p13 = scmp.lt.u32.totalorder %s1983_s3, %s2385_s26 }
 0x1cf   : > { %p1985_p7 = pnand %p1984_p6, %p2108_p4 }
 0x1d0   : > { %p1990_p12 = por %p1989_p11, %p1988_p10 }
 0x1d1   : > { %p1986_p9 = pneg %p1985_p7 }
 0x1d2   : > { %p1992_p0 = por %p1991_p13, %p1990_p12 }
 0x1d4   : > { %p1993_p1 = pnand %p1992_p0, %p1986_p9 }
 0x1d6   : > { %1996 = shalt.err (!%p1993_p1)
}
 0x1d7   : > { %s2051_s15 = smov 128   ;;  %s2052_s16 = smov 8  }
 0x1d8   : > { %1907 = dma.vmem_to_hbm [thread:$0]  (%p2108_p4), %s2387_s23, 1024, %s2385_s26, %s2395_s12, %s2051_s15, %s2051_s15, %s2052_s16  }
 0x1d9 PF: > { %p1913_p2 = scmp.ge.s32.totalorder %s2047_s14, 2  ;;  %s1488_s18 = sand.u32 1, %s2027_s9  }
 0x1da   : > { %s1489_s20 = scalar_lea.sflag [#allocation3], %s1488_s18 }
 0x1db   : > { %p1910_p3 = pnand %p1913_p2, %p2115_p8 }
 0x1dd   : > { %2022 = dma.done.wait (!%p1910_p3), %s1489_s20, 1024  }
 0x1de   : > { %2024 = vsyncadd (!%p1910_p3), %s1489_s20, 4294966272  ;;  %s15_s14 = sadd.s32 1, %s2047_s14   ;;  %s2446_s9 = smov %s2031_s10 }
 0x1df   : > { %p12_p5 = scmp.ge.s32.totalorder %s15_s14, 4   ;;  %s2447_s10 = smov %s2035_s11 }
 0x1e0   : > { %s2448_s11 = smov %s2121_s22  ;;  %s2449_s12 = smov %s2043_s13 }
 0x1e1   : > { %s2450_s13 = smov %s2452_s17  ;;  %14 = sbr.rel (!%p12_p5) target bundleno = 4 (0x4), region = 67 }
 0x1e8   :  { %1494 = vsyncpa [#allocation3], 1 }
 0x1e9   :  { %1496 = vsyncpa [#allocation3 + $0x1], 1 }

</bundles_post_ra>
